<compile_context>
chip_gen: v7x
topology: tpu7x:2x2x1
jax: 0.10.0
libtpu: 0.0.40
codegen_flags: <defaults>
</compile_context>

<pallas_src>
import functools

import jax
import jax.numpy as jnp
from jax import lax
from jax.experimental import pallas as pl
from jax.experimental.pallas import tpu as pltpu

STATE_SIZE = 33
ACTION_SIZE = 4
HIDDEN_SIZE = 256
BN_EPS = 1e-5

# Crossover sized for the smallest-VMEM generation (v7x: 64 MiB physical).
# Fused kernel live VMEM is ~3 KB/row (x padded to 128 lanes, xn, h, out) plus
# ~0.3 MB of weights: 8192 rows ~= 25 MiB, comfortably inside the 48 MiB limit.
# v5e/v6e (128 MiB physical) could ride this path further; 8192 is a safe common cap.
_FUSED_MAX_ROWS = 8192
_FUSED_VMEM_LIMIT = 48 << 20
_DEFAULT_BATCH_TILE = 2048


# --------------------------------------------------------------------------
# Path 1 (B <= _FUSED_MAX_ROWS): whole forward in one grid-less kernel.
# One-pass BN statistics (sum / sum-of-squares) to minimize live intermediates.
# --------------------------------------------------------------------------
def _actor_fused_kernel(x_ref, w1_ref, b1_ref, w2_ref, b2_ref, mean_ref):
    x = x_ref[...]                                        # (B, S) f32
    # BatchNorm1d training-mode statistics (biased variance); gamma/beta are
    # already folded into w1/b1, so only the normalization remains.
    mu = jnp.mean(x, axis=0, keepdims=True)               # (1, S)
    ex2 = jnp.mean(x * x, axis=0, keepdims=True)          # (1, S)
    var = jnp.maximum(ex2 - mu * mu, 0.0)
    xn = (x - mu) * lax.rsqrt(var + BN_EPS)

    h = jnp.dot(xn, w1_ref[...], preferred_element_type=jnp.float32) + b1_ref[...]
    h = jnp.maximum(h, 0.0)
    m = jnp.dot(h, w2_ref[...], preferred_element_type=jnp.float32) + b2_ref[...]
    mean_ref[...] = jnp.tanh(m)


def _actor_fused_call(state, w1f, b1f, w2, b2):
    B = state.shape[0]
    vmem = pl.BlockSpec(memory_space=pltpu.MemorySpace.VMEM)
    return pl.pallas_call(
        _actor_fused_kernel,
        out_shape=jax.ShapeDtypeStruct((B, ACTION_SIZE), jnp.float32),
        in_specs=[vmem] * 5,
        out_specs=vmem,
        compiler_params=pltpu.CompilerParams(vmem_limit_bytes=_FUSED_VMEM_LIMIT),
    )(state, w1f, b1f, w2, b2)


# --------------------------------------------------------------------------
# Path 2 (B > _FUSED_MAX_ROWS): single phase-fused kernel, grid=(2, B//tile).
#   phase 0: accumulate sum / sumsq over all batch tiles into VMEM scratch,
#            finalize to (mu, 1/sqrt(var+eps)) on the last tile.
#   phase 1: normalize with the full-batch stats, matmul, ReLU, matmul, tanh.
# Both axes "arbitrary": the shared scratch requires single-TC execution; the
# workload is overhead-bound so this beats a second launch + megacore split.
# --------------------------------------------------------------------------
def _actor_phased_kernel(x_ref, w1_ref, b1_ref, w2_ref, b2_ref, mean_ref,
                         mu_ref, inv_ref, *, batch_size):
    p = pl.program_id(0)
    i = pl.program_id(1)
    n = pl.num_programs(1)

    @pl.when(p == 0)
    def _stats_phase():
        @pl.when(i == 0)
        def _():
            mu_ref[...] = jnp.zeros_like(mu_ref)
            inv_ref[...] = jnp.zeros_like(inv_ref)

        x = x_ref[...]                                        # (TB, S)
        mu_ref[...] += jnp.sum(x, axis=0, keepdims=True)      # running sum
        inv_ref[...] += jnp.sum(x * x, axis=0, keepdims=True)  # running sum of sq

        @pl.when(i == n - 1)
        def _():
            inv_n = jnp.float32(1.0 / batch_size)
            m = mu_ref[...] * inv_n
            v = inv_ref[...] * inv_n - m * m                  # biased batch variance
            mu_ref[...] = m
            inv_ref[...] = lax.rsqrt(jnp.maximum(v, 0.0) + BN_EPS)

        # Keep the phase-0 writeback of this output block well-defined; it is
        # overwritten with the real result in phase 1.
        mean_ref[...] = jnp.zeros_like(mean_ref)

    @pl.when(p == 1)
    def _compute_phase():
        xn = (x_ref[...] - mu_ref[...]) * inv_ref[...]
        h = jnp.dot(xn, w1_ref[...], preferred_element_type=jnp.float32) + b1_ref[...]
        h = jnp.maximum(h, 0.0)
        m = jnp.dot(h, w2_ref[...], preferred_element_type=jnp.float32) + b2_ref[...]
        mean_ref[...] = jnp.tanh(m)


def _actor_phased_call(state, w1f, b1f, w2, b2, batch_tile):
    B, S = state.shape
    H = w1f.shape[1]
    A = w2.shape[1]
    const = lambda p, i: (0, 0)   # weights stay resident across the whole grid
    kernel = functools.partial(_actor_phased_kernel, batch_size=B)
    return pl.pallas_call(
        kernel,
        out_shape=jax.ShapeDtypeStruct((B, A), jnp.float32),
        grid=(2, B // batch_tile),
        in_specs=[
            pl.BlockSpec((batch_tile, S), lambda p, i: (i, 0)),  # state tile
            pl.BlockSpec((S, H), const),                         # folded w1
            pl.BlockSpec((1, H), const),                         # folded b1
            pl.BlockSpec((H, A), const),                         # w2
            pl.BlockSpec((1, A), const),                         # b2
        ],
        out_specs=pl.BlockSpec((batch_tile, A), lambda p, i: (i, 0)),
        scratch_shapes=[pltpu.VMEM((1, S), jnp.float32),   # sum -> mu
                        pltpu.VMEM((1, S), jnp.float32)],  # sumsq -> 1/sqrt(var+eps)
        compiler_params=pltpu.CompilerParams(
            dimension_semantics=("arbitrary", "arbitrary")),
    )(state, w1f, b1f, w2, b2)


def _pick_tile(B, cap=_DEFAULT_BATCH_TILE):
    for t in (2048, 1024, 512, 256, 128, 64, 32, 16, 8):
        if t <= cap and B % t == 0:
            return t
    return None


# --------------------------------------------------------------------------
# Parameters and public forward
# --------------------------------------------------------------------------
def init_params(key):
    """Synthetic parameters mirroring the PyTorch module's tensors."""
    k1, k2, k3, k4, k5, k6 = jax.random.split(key, 6)
    bound1 = 1.0 / jnp.sqrt(STATE_SIZE)
    bound2 = 1.0 / jnp.sqrt(HIDDEN_SIZE)
    # Non-trivial gamma/beta so the affine fold is actually exercised.
    gamma = 1.0 + 0.1 * jax.random.normal(k5, (1, STATE_SIZE), jnp.float32)
    beta = 0.1 * jax.random.normal(k6, (1, STATE_SIZE), jnp.float32)
    w1 = jax.random.uniform(k1, (STATE_SIZE, HIDDEN_SIZE), jnp.float32, -bound1, bound1)
    b1 = jax.random.uniform(k2, (1, HIDDEN_SIZE), jnp.float32, -bound1, bound1)
    w2 = jax.random.uniform(k3, (HIDDEN_SIZE, ACTION_SIZE), jnp.float32, -bound2, bound2)
    b2 = jax.random.uniform(k4, (1, ACTION_SIZE), jnp.float32, -bound2, bound2)
    log_std = jnp.zeros((1, ACTION_SIZE), jnp.float32)   # nn.Parameter(zeros(action_size))
    return gamma, beta, w1, b1, w2, b2, log_std


def prepare_params(params):
    """One-time parameter transform (NOT per-call work):
       - fold BatchNorm affine into the first Linear,
       - precompute the input-independent policy std (Normal's scale)."""
    gamma, beta, w1, b1, w2, b2, log_std = params
    w1f = gamma.reshape(-1, 1) * w1                      # (S, H)
    b1f = beta @ w1 + b1                                 # (1, H)
    std = jnp.clip(jnp.exp(log_std), 0.001, 50.0)        # (1, A)
    return w1f, b1f, w2, b2, std


def actor_forward(state, prepared, *, fused_max_rows=_FUSED_MAX_ROWS, batch_tile=None):
    """Returns (policy_mean, policy_std): the (loc, scale) of Normal(mean, std).
    std is (1, action_size) — input independent, broadcasts in Normal.
    Note: BatchNorm is modeled in training mode (batch statistics, no running-stats
    update); PyTorch would raise for B=1 in training mode, this code does not."""
    w1f, b1f, w2, b2, std = prepared
    B = state.shape[0]
    if B <= fused_max_rows:
        mean = _actor_fused_call(state, w1f, b1f, w2, b2)
    else:
        tile = batch_tile if batch_tile is not None else _pick_tile(B)
        if tile is None or B % tile != 0 or tile % 8 != 0:
            # TODO(synk): pad-and-mask remainder handling for B not a multiple of 8;
            # for now fall back to the fused kernel (may need a larger vmem limit
            # for extremely large ragged batches).
            mean = _actor_fused_call(state, w1f, b1f, w2, b2)
        else:
            mean = _actor_phased_call(state, w1f, b1f, w2, b2, tile)
    return mean, std


def reference_forward(state, params):
    gamma, beta, w1, b1, w2, b2, log_std = params
    mu = jnp.mean(state, axis=0, keepdims=True)
    var = jnp.mean((state - mu) ** 2, axis=0, keepdims=True)
    xn = (state - mu) / jnp.sqrt(var + BN_EPS) * gamma + beta
    h = jnp.maximum(xn @ w1 + b1, 0.0)
    mean = jnp.tanh(h @ w2 + b2)
    std = jnp.clip(jnp.exp(log_std), 0.001, 50.0)
    return mean, std


if __name__ == "__main__":
    key = jax.random.PRNGKey(0)
    kx1, kx2, kx3, kp = jax.random.split(key, 4)

    params = init_params(kp)
    prepared = prepare_params(params)                    # one-time fold + std

    # 1) small rollout batch -> single grid-less fused kernel
    B = 8
    state = jax.random.normal(kx1, (B, STATE_SIZE), jnp.float32)
    mean, std = actor_forward(state, prepared)
    jax.block_until_ready((mean, std))
    ref_mean, ref_std = reference_forward(state, params)
    assert mean.shape == (B, ACTION_SIZE)
    assert jnp.allclose(mean, ref_mean, atol=1e-4), "fused(B=8) mean mismatch"
    assert jnp.allclose(std, ref_std, atol=1e-6), "std mismatch"

    # 2) mid-size batch now also rides the single fused kernel (was 2 launches before)
    B = 256
    state2 = jax.random.normal(kx2, (B, STATE_SIZE), jnp.float32)
    mean2, _ = actor_forward(state2, prepared)
    jax.block_until_ready(mean2)
    ref_mean2, _ = reference_forward(state2, params)
    assert jnp.allclose(mean2, ref_mean2, atol=2e-4), "fused(B=256) mean mismatch"

    # 3) force the single-launch phase-fused path (used automatically only for B > 8192)
    B = 512
    state3 = jax.random.normal(kx3, (B, STATE_SIZE), jnp.float32)
    mean3, _ = actor_forward(state3, prepared, fused_max_rows=0, batch_tile=128)
    jax.block_until_ready(mean3)
    ref_mean3, _ = reference_forward(state3, params)
    assert jnp.allclose(mean3, ref_mean3, atol=2e-4), "phased(B=512) mean mismatch"

    print("KERNEL_OK")
</pallas_src>

<mosaic_0001>
module attributes {stable_mosaic.version = 11 : i64} {
  func.func @_actor_fused_kernel(%arg0: memref<8x33xf32, #tpu.memory_space<vmem>>, %arg1: memref<33x256xf32, #tpu.memory_space<vmem>>, %arg2: memref<1x256xf32, #tpu.memory_space<vmem>>, %arg3: memref<256x4xf32, #tpu.memory_space<vmem>>, %arg4: memref<1x4xf32, #tpu.memory_space<vmem>>, %arg5: memref<8x4xf32, #tpu.memory_space<vmem>>) attributes {dimension_semantics = [], scalar_prefetch = 0 : i64, scratch_operands = 0 : i64, tpu.core_type = #tpu.core_type<tc>} {
    %c0 = arith.constant 0 : index
    %c0_0 = arith.constant 0 : index
    %0 = vector.load %arg0[%c0, %c0_0] : memref<8x33xf32, #tpu.memory_space<vmem>>, vector<8x33xf32>
    %cst = arith.constant dense<0.000000e+00> : vector<33xf32>
    %1 = vector.multi_reduction <add>, %0, %cst [0] : vector<8x33xf32> to vector<33xf32>
    %2 = vector.shape_cast %1 : vector<33xf32> to vector<1x33xf32>
    %cst_1 = arith.constant 8.000000e+00 : f32
    %3 = vector.broadcast %cst_1 : f32 to vector<1x33xf32>
    %4 = arith.divf %2, %3 : vector<1x33xf32>
    %5 = arith.mulf %0, %0 : vector<8x33xf32>
    %cst_2 = arith.constant dense<0.000000e+00> : vector<33xf32>
    %6 = vector.multi_reduction <add>, %5, %cst_2 [0] : vector<8x33xf32> to vector<33xf32>
    %7 = vector.shape_cast %6 : vector<33xf32> to vector<1x33xf32>
    %cst_3 = arith.constant 8.000000e+00 : f32
    %8 = vector.broadcast %cst_3 : f32 to vector<1x33xf32>
    %9 = arith.divf %7, %8 : vector<1x33xf32>
    %10 = arith.mulf %4, %4 : vector<1x33xf32>
    %11 = arith.subf %9, %10 : vector<1x33xf32>
    %cst_4 = arith.constant 0.000000e+00 : f32
    %12 = vector.broadcast %cst_4 : f32 to vector<1x33xf32>
    %13 = arith.maximumf %11, %12 : vector<1x33xf32>
    %14 = vector.broadcast %4 : vector<1x33xf32> to vector<8x33xf32>
    %15 = arith.subf %0, %14 : vector<8x33xf32>
    %cst_5 = arith.constant 9.99999974E-6 : f32
    %16 = vector.broadcast %cst_5 : f32 to vector<1x33xf32>
    %17 = arith.addf %13, %16 : vector<1x33xf32>
    %18 = math.rsqrt %17 : vector<1x33xf32>
    %19 = vector.broadcast %18 : vector<1x33xf32> to vector<8x33xf32>
    %20 = arith.mulf %15, %19 : vector<8x33xf32>
    %c0_6 = arith.constant 0 : index
    %c0_7 = arith.constant 0 : index
    %21 = vector.load %arg1[%c0_6, %c0_7] : memref<33x256xf32, #tpu.memory_space<vmem>>, vector<33x256xf32>
    %cst_8 = arith.constant dense<0.000000e+00> : vector<8x256xf32>
    %22 = tpu.matmul %20, %21, %cst_8 {dimension_numbers = #tpu.dot_dimension_numbers<[1], [0], [0], [1], [0, 0, 1, 1], [], []>} : vector<8x33xf32>, vector<33x256xf32>, vector<8x256xf32> -> vector<8x256xf32>
    %c0_9 = arith.constant 0 : index
    %c0_10 = arith.constant 0 : index
    %23 = vector.load %arg2[%c0_9, %c0_10] : memref<1x256xf32, #tpu.memory_space<vmem>>, vector<1x256xf32>
    %24 = vector.broadcast %23 : vector<1x256xf32> to vector<8x256xf32>
    %25 = arith.addf %22, %24 : vector<8x256xf32>
    %cst_11 = arith.constant 0.000000e+00 : f32
    %26 = vector.broadcast %cst_11 : f32 to vector<8x256xf32>
    %27 = arith.maximumf %25, %26 : vector<8x256xf32>
    %c0_12 = arith.constant 0 : index
    %c0_13 = arith.constant 0 : index
    %28 = vector.load %arg3[%c0_12, %c0_13] : memref<256x4xf32, #tpu.memory_space<vmem>>, vector<256x4xf32>
    %cst_14 = arith.constant dense<0.000000e+00> : vector<8x4xf32>
    %29 = tpu.matmul %27, %28, %cst_14 {dimension_numbers = #tpu.dot_dimension_numbers<[1], [0], [0], [1], [0, 0, 1, 1], [], []>} : vector<8x256xf32>, vector<256x4xf32>, vector<8x4xf32> -> vector<8x4xf32>
    %c0_15 = arith.constant 0 : index
    %c0_16 = arith.constant 0 : index
    %30 = vector.load %arg4[%c0_15, %c0_16] : memref<1x4xf32, #tpu.memory_space<vmem>>, vector<1x4xf32>
    %31 = vector.broadcast %30 : vector<1x4xf32> to vector<8x4xf32>
    %32 = arith.addf %29, %31 : vector<8x4xf32>
    %33 = math.tanh %32 : vector<8x4xf32>
    %c0_17 = arith.constant 0 : index
    %c0_18 = arith.constant 0 : index
    %34 = vector.load %arg5[%c0_17, %c0_18] : memref<8x4xf32, #tpu.memory_space<vmem>>, vector<8x4xf32>
    tpu.vector_store %arg5[%c0_17, %c0_18], %33 {strides = array<i32>} : memref<8x4xf32, #tpu.memory_space<vmem>>, vector<8x4xf32>,
    return
  }
}

</mosaic_0001>

<bundles_post_ra>
// kernel: tpu_custom_call.1
= control target key start
LH: loop header
LB: loop body
LE: loop exit
PB: predicated region body
PF: predicated region fallthrough
CT: control target
= control target key end

     0   :  { %v352_v3 = vmov 0.0   ;;  %vm21_vm0 = vcmask 269312   ;;  %vm72_vm1 = vcmask 1040384   ;;  %vm262_vm2 = vcmask 31744   ;;  %s532_s1 = inlined_call_operand.vmem [shape: f32[33,256], index: 1, kind: input, shape index: {}]   ;;  %s533_s0 = inlined_call_operand.vmem [shape: f32[8,33], index: 0, kind: input, shape index: {}]   ;;  %s534_s3 = inlined_call_operand.vmem [shape: f32[256,4], index: 3, kind: input, shape index: {}]   ;;  %s535_s2 = inlined_call_operand.vmem [shape: f32[1,256], index: 2, kind: input, shape index: {}]   ;;  %s536_s4 = inlined_call_operand.vmem [shape: f32[1,4], index: 4, kind: input, shape index: {}]   ;;  %s537_s5 = inlined_call_operand.vmem [shape: f32[8,4], index: 5, kind: output, shape index: {}]  }
   0x1   :  { %v48_v0 = vld [vmem:[%s532_s1 + $0x8] sm:$0xff]  ;;  %v50_v1 = vld [vmem:[%s532_s1 + $0x18] sm:$0xff]  ;;  %v47_v2 = vld [vmem:[%s532_s1] sm:$0xff]  ;;  %143 = vmatprep.mubr.f32.mxu0 %v352_v3 }
   0x2   :  { %v307_v4 = vpack.c.bf16 %v50_v1, %v48_v0  ;;  %v49_v5 = vld [vmem:[%s532_s1 + $0x10] sm:$0xff]  ;;  %v52_v6 = vld [vmem:[%s532_s1 + $0x28] sm:$0xff]  ;;  %v54_v7 = vld [vmem:[%s532_s1 + $0x38] sm:$0xff] }
   0x3   :  { %v309_v8 = vpack.c.bf16 %v49_v5, %v47_v2  ;;  %v311_v9 = vpack.c.bf16 %v54_v7, %v52_v6  ;;  %v51_v10 = vld [vmem:[%s532_s1 + $0x20] sm:$0xff]  ;;  %v53_v11 = vld [vmem:[%s532_s1 + $0x30] sm:$0xff]  ;;  %v56_v15 = vld [vmem:[%s532_s1 + $0x48] sm:$0x1] }
   0x4   :  { %308 = vmatprep.subr.bf16.mxu0 %v307_v4  ;;  %v410_v12 = vld [vmem:[%s533_s0] sm:$0xff]  ;;  %v313_v14 = vpack.c.bf16 %v53_v11, %v51_v10  ;;  %v169_v18 = vld [vmem:[%s534_s3 + $0x88] sm:$0xff]  ;;  %v170_v24 = vld [vmem:[%s534_s3 + $0x90] sm:$0xff] }
   0x5   :  { %v168_v13 = vld [vmem:[%s534_s3 + $0x80] sm:$0xff]  ;;  %310 = vmatpush1.bf16.msra.mxu0 %v309_v8  ;;  %v22_v16 = vsel %vm21_vm0, %v410_v12, 0.0  ;;  %v31_v17 = vmul.f32 %v410_v12, %v410_v12  ;;  %v153_v20 = vld [vmem:[%s534_s3 + $0x8] sm:$0xff]  ;;  %v171_v25 = vld [vmem:[%s534_s3 + $0x98] sm:$0xff] }
   0x6   :  { %v152_v19 = vld [vmem:[%s534_s3] sm:$0xff]  ;;  %312 = vmatprep.subr.bf16.mxu0 %v311_v9  ;;  %v23_v21 = vrot.slane %v22_v16, 4  ;;  %v315_v22 = vpack.c.bf16 %v169_v18, %v168_v13  ;;  %v154_v26 = vld [vmem:[%s534_s3 + $0x10] sm:$0xff]  ;;  %v319_v28 = vpack.c.bf16 %v171_v25, %v170_v24  ;;  %v155_v29 = vld [vmem:[%s534_s3 + $0x18] sm:$0xff]  ;;  %v59_v24 = vlaneseq }
   0x7   :  { %v317_v23 = vpack.c.bf16 %v153_v20, %v152_v19  ;;  %v32_v27 = vsel %vm21_vm0, %v31_v17, 0.0  ;;  %v172_v30 = vld [vmem:[%s534_s3 + $0xa0] sm:$0xff]  ;;  %v173_v31 = vld [vmem:[%s534_s3 + $0xa8] sm:$0xff]  ;;  %v321_v34 = vpack.c.bf16 %v155_v29, %v154_v26  ;;  %v174_v41 = vld [vmem:[%s534_s3 + $0xb0] sm:$0xff] }
   0x8   :  { %v24_v32 = vadd.f32 %v23_v21, %v22_v16  ;;  %v33_v33 = vrot.slane %v32_v27, 4  ;;  %316 = vmatprep.subr.bf16.mxu1 %v315_v22  ;;  %v55_v35 = vld [vmem:[%s532_s1 + $0x40] sm:$0x1]  ;;  %v323_v38 = vpack.c.bf16 %v173_v31, %v172_v30  ;;  %v157_v40 = vld [vmem:[%s534_s3 + $0x28] sm:$0xff]  ;;  %v175_v42 = vld [vmem:[%s534_s3 + $0xb8] sm:$0xff]  ;;  %v60_v25 = vshrl.u32 %v59_v24, 7 }
   0x9   :  { %314 = vmatpush1.bf16.msra.mxu0 %v313_v14  ;;  %318 = vmatpush3.bf16.msra.mxu1 %v317_v23  ;;  %v156_v39 = vld [vmem:[%s534_s3 + $0x20] sm:$0xff]  ;;  %v327_v48 = vpack.c.bf16 %v175_v42, %v174_v41  ;;  %v158_v49 = vld [vmem:[%s534_s3 + $0x30] sm:$0xff]  ;;  %v159_v50 = vld [vmem:[%s534_s3 + $0x38] sm:$0xff] }
   0xa   :  { %268 = vmatprep.subr.msk.mxu0 %vm72_vm1, %v56_v15  ;;  %v25_v36 = vrot.slane %v24_v32, 2  ;;  %v34_v37 = vadd.f32 %v33_v33, %v32_v27  ;;  %320 = vmatprep.subr.bf16.mxu1 %v319_v28  ;;  %v325_v45 = vpack.c.bf16 %v157_v40, %v156_v39  ;;  %v176_v51 = vld [vmem:[%s534_s3 + $0xc0] sm:$0xff]  ;;  %v177_v52 = vld [vmem:[%s534_s3 + $0xc8] sm:$0xff]  ;;  %v329_v55 = vpack.c.bf16 %v159_v50, %v158_v49  ;;  %v178_v61 = vld [vmem:[%s534_s3 + $0xd0] sm:$0xff] }
   0xb   :  { %v331_v58 = vpack.c.bf16 %v177_v52, %v176_v51  ;;  %v160_v59 = vld [vmem:[%s534_s3 + $0x40] sm:$0xff]  ;;  %v161_v60 = vld [vmem:[%s534_s3 + $0x48] sm:$0xff]  ;;  %v179_v62 = vld [vmem:[%s534_s3 + $0xd8] sm:$0xff]  ;;  %v61_v26 = vsub.s32 0, %v60_v25  ;;  %v65_v28 = vsub.s32 1, %v60_v25 }
   0xc   :  { %v26_v43 = vadd.f32 %v25_v36, %v24_v32  ;;  %v35_v44 = vrot.slane %v34_v37, 2  ;;  %v333_v1 = vpack.c.bf16 %v161_v60, %v160_v59  ;;  %v335_v3 = vpack.c.bf16 %v179_v62, %v178_v61  ;;  %v162_v4 = vld [vmem:[%s534_s3 + $0x50] sm:$0xff]  ;;  %v163_v5 = vld [vmem:[%s534_s3 + $0x58] sm:$0xff]  ;;  %v180_v6 = vld [vmem:[%s534_s3 + $0xe0] sm:$0xff] }
   0xd   :  { %269 = vmatpush1.msk.msra.mxu0 %vm72_vm1, %v55_v35  ;;  %322 = vmatpush3.bf16.msra.mxu1 %v321_v34  ;;  %v181_v7 = vld [vmem:[%s534_s3 + $0xe8] sm:$0xff]  ;;  %v337_v9 = vpack.c.bf16 %v163_v5, %v162_v4  ;;  %v164_v16 = vld [vmem:[%s534_s3 + $0x60] sm:$0xff]  ;;  %v182_v19 = vld [vmem:[%s534_s3 + $0xf0] sm:$0xff] }
   0xe   :  { %v27_v46 = vrot.slane %v26_v43, 1  ;;  %v36_v47 = vadd.f32 %v35_v44, %v34_v37  ;;  %324 = vmatprep.subr.bf16.mxu1 %v323_v38  ;;  %v339_v11 = vpack.c.bf16 %v181_v7, %v180_v6  ;;  %v165_v17 = vld [vmem:[%s534_s3 + $0x68] sm:$0xff]  ;;  %v166_v21 = vld [vmem:[%s534_s3 + $0x70] sm:$0xff]  ;;  %v167_v22 = vld [vmem:[%s534_s3 + $0x78] sm:$0xff] }
   0xf   :  { %v341_v18 = vpack.c.bf16 %v165_v17, %v164_v16  ;;  %v345_v23 = vpack.c.bf16 %v167_v22, %v166_v21  ;;  %v57_v27 = vld [vmem:[%s535_s2] sm:$0x3] }
  0x10   :  { %v28_v53 = vadd.f32 %v27_v46, %v26_v43  ;;  %v37_v54 = vrot.slane %v36_v47, 1  ;;  %v62_v29 = vrot.slane %v57_v27, %v61_v26  ;;  %v66_v30 = vrot.slane %v57_v27, %v65_v28  ;;  %v271_v38 = vld [vmem:[%s536_s4] ss:$0 sm:$0xff] }
  0x11   :  { %326 = vmatpush3.bf16.msra.mxu1 %v325_v45 }
  0x12   :  { %v30_v56 = vmul.f32 0.125, %v28_v53  ;;  %v38_v57 = vadd.f32 %v37_v54, %v36_v47  ;;  %328 = vmatprep.subr.bf16.mxu1 %v327_v48 }
  0x14   :  { %v39_v63 = vmul.f32 0.125, %v38_v57  ;;  %v40_v0 = vmul.f32 %v30_v56, %v30_v56  ;;  %v43_v13 = vsub.f32 %v410_v12, %v30_v56  ;;  %v183_v12 = vld [vmem:[%s534_s3 + $0xf8] sm:$0xff] }
  0x15   :  { %330 = vmatpush3.bf16.msra.mxu1 %v329_v55  ;;  %v343_v20 = vpack.c.bf16 %v183_v12, %v182_v19 }
  0x16   :  { %v41_v2 = vsub.f32 %v39_v63, %v40_v0  ;;  %332 = vmatprep.subr.bf16.mxu1 %v331_v58 }
  0x18   :  { %v42_v8 = vmax.f32 %v41_v2, 0.0 }
  0x19   :  { %334 = vmatpush3.bf16.msra.mxu1 %v333_v1 }
  0x1a   :  { %v44_v10 = vadd.f32 1e-05, %v42_v8  ;;  %336 = vmatprep.subr.bf16.mxu1 %v335_v3 }
  0x1c   :  { %348 = vrsqrt.f32 %v44_v10 }
  0x1d   :  { %338 = vmatpush3.bf16.msra.mxu1 %v337_v9 }
  0x1e   :  { %340 = vmatprep.subr.bf16.mxu1 %v339_v11 }
  0x21   :  { %342 = vmatpush3.bf16.msra.mxu1 %v341_v18 }
  0x22   :  { %344 = vmatprep.subr.bf16.mxu1 %v343_v20 }
  0x25   :  { %346 = vmatpush3.bf16.msra.mxu1 %v345_v23 }
  0x26   :  { %v349_v14 = vpop.eup %348 }
  0x27   :  { %v46_v15 = vmul.f32 %v349_v14, %v43_v13 }
  0x29   :  { %270 = vmatmul.mubr.msk.f32.vlgmr.msra.gmra.mrb[0].mxu0 %vm21_vm0, %v46_v15 }
  0xfc   :  { %v145_v31 = vpop.f32.mrb[0].mxu0 }
  0xfd   :  { %v146_v32 = vadd.f32 %v145_v31, %v62_v29  ;;  %v147_v33 = vpop.f32.mrb[1].mxu0 }
  0xfe   :  { %v148_v34 = vadd.f32 %v147_v33, %v66_v30 }
  0xff   :  { %v150_v36 = vmax.f32 %v146_v32, 0.0 }
 0x100   :  { %v151_v35 = vmax.f32 %v148_v34, 0.0 }
 0x102   :  { %255 = vmatprep.mubr.f32.mxu1 %v151_v35 }
 0x103   :  { %256 = vmatmul.mubr.f32.vlgmr.msra.gmra.mrb[0].mxu1 %v150_v36 }
 0x1d6   :  { %v304_v37 = vpop.f32.mrb[0].mxu1 }
 0x1d7   :  { %v305_v39 = vpop.f32.mrb[1].mxu1 }
 0x1d8   :  { %v306_v40 = vadd.f32 %v305_v39, %v304_v37 }
 0x1da   :  { %v258_v41 = vadd.f32 %v306_v40, %v271_v38 }
 0x1dc   :  { %350 = vtanh.f32 %v258_v41 }
 0x1e6   :  { %v351_v42 = vpop.eup %350 }
 0x1e7   :  { %263 = vst.msk [vmem:[%s537_s5] sm:$0xff] %vm262_vm2, %v351_v42 }

</bundles_post_ra>
